<compile_context>
chip_gen: v7x
topology: tpu7x:2x2x1
jax: 0.10.0
libtpu: 0.0.40
codegen_flags: <defaults>
</compile_context>

<pallas_src>
import itertools

import numpy as np
import jax
import jax.numpy as jnp
from jax.experimental import pallas as pl
from jax.experimental.pallas import tpu as pltpu


# ----------------------------------------------------------------------------
# Pallas kernel: DETR matching cost matrices for Bt images per grid step
# ----------------------------------------------------------------------------
def make_cost_kernel(cost_class_w: float, cost_bbox_w: float, cost_giou_w: float):
    def kernel(logits_ref, pred_boxes_ref, labels_ref, gt_boxes_t_ref, cost_ref):
        logits = logits_ref[...].astype(jnp.float32)      # (Bt, Q, C)
        pred = pred_boxes_ref[...].astype(jnp.float32)    # (Bt, Q, 4)  cxcywh
        labels = labels_ref[...]                          # (Bt, 1, Gp) int32
        gt_t = gt_boxes_t_ref[...].astype(jnp.float32)    # (Bt, 4, Gp) xyxy rows

        Bt, Q, C = logits.shape
        G = labels.shape[-1]

        # ---- softmax over classes ------------------------------------------
        m = jnp.max(logits, axis=-1, keepdims=True)
        e = jnp.exp(logits - m)
        probs = e / jnp.sum(e, axis=-1, keepdims=True)    # (Bt, Q, C)

        # ---- cost_class = -probs[:, :, gt_labels] via one-hot batched matmul
        iota_c = jax.lax.broadcasted_iota(jnp.int32, (Bt, C, G), 1)
        onehot = (iota_c == labels).astype(jnp.float32)   # (Bt, C, G)
        cost_class = -jnp.einsum("bqc,bcg->bqg", probs, onehot,
                                 preferred_element_type=jnp.float32)

        # ---- per-coordinate views -------------------------------------------
        pcx = pred[:, :, 0:1]; pcy = pred[:, :, 1:2]      # (Bt, Q, 1)
        pw = pred[:, :, 2:3]; ph = pred[:, :, 3:4]
        gx0 = gt_t[:, 0:1, :]; gy0 = gt_t[:, 1:2, :]      # (Bt, 1, Gp)
        gx1 = gt_t[:, 2:3, :]; gy1 = gt_t[:, 3:4, :]

        # ---- cost_bbox: L1 cdist(pred cxcywh, gt xyxy->cxcywh) ---------------
        gcx = (gx0 + gx1) * 0.5
        gcy = (gy0 + gy1) * 0.5
        gw = gx1 - gx0
        gh = gy1 - gy0
        cost_bbox = (jnp.abs(pcx - gcx) + jnp.abs(pcy - gcy)
                     + jnp.abs(pw - gw) + jnp.abs(ph - gh))          # (Bt, Q, Gp)

        # ---- cost_giou: -GIoU(pred cxcywh->xyxy, gt xyxy) --------------------
        px0 = pcx - 0.5 * pw; px1 = pcx + 0.5 * pw
        py0 = pcy - 0.5 * ph; py1 = pcy + 0.5 * ph

        area_p = (px1 - px0) * (py1 - py0)                           # (Bt, Q, 1)
        area_g = (gx1 - gx0) * (gy1 - gy0)                           # (Bt, 1, Gp)

        ix0 = jnp.maximum(px0, gx0); iy0 = jnp.maximum(py0, gy0)
        ix1 = jnp.minimum(px1, gx1); iy1 = jnp.minimum(py1, gy1)
        inter = jnp.maximum(ix1 - ix0, 0.0) * jnp.maximum(iy1 - iy0, 0.0)
        union = area_p + area_g - inter
        iou = inter / union

        cx0 = jnp.minimum(px0, gx0); cy0 = jnp.minimum(py0, gy0)
        cx1 = jnp.maximum(px1, gx1); cy1 = jnp.maximum(py1, gy1)
        area_c = (cx1 - cx0) * (cy1 - cy0)
        giou = iou - (area_c - union) / area_c
        cost_giou = -giou

        cost_ref[...] = (cost_bbox_w * cost_bbox
                         + cost_class_w * cost_class
                         + cost_giou_w * cost_giou).astype(cost_ref.dtype)

    return kernel


def compute_cost_matrices(pred_logits, pred_boxes, gt_labels_pad, gt_boxes_pad,
                          cost_class=1.0, cost_bbox=1.0, cost_giou=1.0,
                          block_b=8):
    """pred_logits [B,Q,C], pred_boxes [B,Q,4], gt_labels_pad [B,Gp] int32,
    gt_boxes_pad [B,Gp,4] xyxy (Gp a multiple of 128) -> cost [B,Q,Gp] f32."""
    B, Q, C = pred_logits.shape
    G = gt_labels_pad.shape[-1]
    assert G % 128 == 0, "pad the GT dimension to a multiple of 128 on the host"

    labels3 = gt_labels_pad.reshape(B, 1, G).astype(jnp.int32)   # (B, 1, Gp)
    gt_t = jnp.transpose(gt_boxes_pad, (0, 2, 1))                # (B, 4, Gp)

    # Batch several images per grid step to amortize per-step overhead; pad
    # the batch (edge-replicated) so the grid divides evenly.  Bt ~ 8 keeps
    # double-buffered tiles well inside v7x's 64 MiB VMEM at DETR sizes.
    Bt = min(block_b, B)
    B_pad = ((B + Bt - 1) // Bt) * Bt
    if B_pad != B:
        pad = B_pad - B
        pred_logits = jnp.pad(pred_logits, ((0, pad), (0, 0), (0, 0)), mode="edge")
        pred_boxes = jnp.pad(pred_boxes, ((0, pad), (0, 0), (0, 0)), mode="edge")
        labels3 = jnp.pad(labels3, ((0, pad), (0, 0), (0, 0)), mode="edge")
        gt_t = jnp.pad(gt_t, ((0, pad), (0, 0), (0, 0)), mode="edge")

    kernel = make_cost_kernel(float(cost_class), float(cost_bbox), float(cost_giou))
    cost = pl.pallas_call(
        kernel,
        out_shape=jax.ShapeDtypeStruct((B_pad, Q, G), jnp.float32),
        grid=(B_pad // Bt,),
        in_specs=[
            pl.BlockSpec((Bt, Q, C), lambda b: (b, 0, 0)),
            pl.BlockSpec((Bt, Q, 4), lambda b: (b, 0, 0)),
            pl.BlockSpec((Bt, 1, G), lambda b: (b, 0, 0)),
            pl.BlockSpec((Bt, 4, G), lambda b: (b, 0, 0)),
        ],
        out_specs=pl.BlockSpec((Bt, Q, G), lambda b: (b, 0, 0)),
        compiler_params=pltpu.CompilerParams(dimension_semantics=("parallel",)),
    )(pred_logits, pred_boxes, labels3, gt_t)   # no host-side f32 upcast

    return cost[:B] if B_pad != B else cost


# ----------------------------------------------------------------------------
# Host-side assignment (no Pallas equivalent: sequential Hungarian algorithm)
# ----------------------------------------------------------------------------
# TODO(synk): linear_sum_assignment is a data-dependent sequential algorithm;
#             it stays on the host (scipy if present, exact brute force otherwise).
def _linear_sum_assignment(cost):
    cost = np.asarray(cost, dtype=np.float64)
    try:
        from scipy.optimize import linear_sum_assignment as lsa
        return lsa(cost)
    except Exception:
        Q, G = cost.shape
        if Q == 0 or G == 0:
            return np.array([], np.int64), np.array([], np.int64)
        if Q >= G:
            best, best_perm = None, None
            for perm in itertools.permutations(range(Q), G):
                s = sum(cost[perm[j], j] for j in range(G))
                if best is None or s < best:
                    best, best_perm = s, perm
            pairs = sorted(zip(best_perm, range(G)))
        else:
            best, best_perm = None, None
            for perm in itertools.permutations(range(G), Q):
                s = sum(cost[i, perm[i]] for i in range(Q))
                if best is None or s < best:
                    best, best_perm = s, perm
            pairs = sorted(zip(range(Q), best_perm))
        rows = np.array([p[0] for p in pairs], np.int64)
        cols = np.array([p[1] for p in pairs], np.int64)
        return rows, cols


class HungarianMatcher:
    """JAX/Pallas port of detr.matcher.HungarianMatcher (forward only)."""

    def __init__(self, cost_class: float = 1, cost_bbox: float = 1, cost_giou: float = 1):
        assert cost_class != 0 or cost_bbox != 0 or cost_giou != 0, "all costs can't be 0"
        self.cost_class = cost_class
        self.cost_bbox = cost_bbox
        self.cost_giou = cost_giou

    def __call__(self, batch_pred_logits, batch_pred_boxes, batch_gt_labels, batch_gt_boxes):
        B = batch_pred_logits.shape[0]
        num_gt = [int(l.shape[0]) for l in batch_gt_labels]

        # Pad the GT axis up to a multiple of 128 (min 128) so the cost
        # matrix's last dim is lane-dense on the TPU; padded columns replicate
        # the last GT (or a default box) and are sliced off before assignment.
        Gmax = max(max(num_gt), 1)
        Gpad = ((Gmax + 127) // 128) * 128

        labels_pad = np.zeros((B, Gpad), np.int32)
        boxes_pad = np.tile(np.array([0.0, 0.0, 1.0, 1.0], np.float32), (B, Gpad, 1))
        for b in range(B):
            g = num_gt[b]
            if g > 0:
                labels_pad[b, :g] = np.asarray(batch_gt_labels[b], np.int32)
                boxes_pad[b, :g] = np.asarray(batch_gt_boxes[b], np.float32)
                labels_pad[b, g:] = labels_pad[b, g - 1]
                boxes_pad[b, g:] = boxes_pad[b, g - 1]

        cost = compute_cost_matrices(
            jnp.asarray(batch_pred_logits), jnp.asarray(batch_pred_boxes),
            jnp.asarray(labels_pad), jnp.asarray(boxes_pad),
            self.cost_class, self.cost_bbox, self.cost_giou)
        cost = np.asarray(jax.block_until_ready(cost))

        assignments = []
        for b in range(B):
            g = num_gt[b]
            rows, cols = _linear_sum_assignment(cost[b, :, :g])
            assignments.append((rows.astype(np.int64), cols.astype(np.int64)))
        return assignments, cost


# ----------------------------------------------------------------------------
# Pure-numpy reference of the cost matrix (for verification)
# ----------------------------------------------------------------------------
def reference_cost(logits, boxes, labels, gt_boxes, wc, wb, wg):
    logits = np.asarray(logits, np.float64)
    boxes = np.asarray(boxes, np.float64)
    gt_boxes = np.asarray(gt_boxes, np.float64)
    e = np.exp(logits - logits.max(-1, keepdims=True))
    probs = e / e.sum(-1, keepdims=True)
    cost_class = -probs[:, labels]
    gcx = (gt_boxes[:, 0] + gt_boxes[:, 2]) / 2
    gcy = (gt_boxes[:, 1] + gt_boxes[:, 3]) / 2
    gw = gt_boxes[:, 2] - gt_boxes[:, 0]
    gh = gt_boxes[:, 3] - gt_boxes[:, 1]
    gt_cxcywh = np.stack([gcx, gcy, gw, gh], -1)
    cost_bbox = np.abs(boxes[:, None, :] - gt_cxcywh[None, :, :]).sum(-1)
    px0 = boxes[:, 0] - boxes[:, 2] / 2; px1 = boxes[:, 0] + boxes[:, 2] / 2
    py0 = boxes[:, 1] - boxes[:, 3] / 2; py1 = boxes[:, 1] + boxes[:, 3] / 2
    p = np.stack([px0, py0, px1, py1], -1)
    area_p = (p[:, 2] - p[:, 0]) * (p[:, 3] - p[:, 1])
    area_g = (gt_boxes[:, 2] - gt_boxes[:, 0]) * (gt_boxes[:, 3] - gt_boxes[:, 1])
    lt = np.maximum(p[:, None, :2], gt_boxes[None, :, :2])
    rb = np.minimum(p[:, None, 2:], gt_boxes[None, :, 2:])
    wh = np.clip(rb - lt, 0, None)
    inter = wh[..., 0] * wh[..., 1]
    union = area_p[:, None] + area_g[None, :] - inter
    iou = inter / union
    clt = np.minimum(p[:, None, :2], gt_boxes[None, :, :2])
    crb = np.maximum(p[:, None, 2:], gt_boxes[None, :, 2:])
    cwh = crb - clt
    area_c = cwh[..., 0] * cwh[..., 1]
    giou = iou - (area_c - union) / area_c
    return wb * cost_bbox + wc * cost_class + wg * (-giou)


if __name__ == "__main__":
    B, Q, C = 2, 8, 6           # batch, num_queries, num_classes
    num_gt = [3, 4]             # per-image number of ground-truth boxes
    key = jax.random.PRNGKey(0)
    k1, k2, k3, k4, k5 = jax.random.split(key, 5)

    pred_logits = jax.random.normal(k1, (B, Q, C), jnp.float32)
    # pred boxes in cxcywh, well inside [0,1]
    centers = jax.random.uniform(k2, (B, Q, 2), jnp.float32, 0.25, 0.75)
    sizes = jax.random.uniform(k3, (B, Q, 2), jnp.float32, 0.05, 0.3)
    pred_boxes = jnp.concatenate([centers, sizes], axis=-1)

    gt_labels_list, gt_boxes_list = [], []
    for b in range(B):
        kb = jax.random.fold_in(k4, b)
        ka, kc = jax.random.split(kb)
        g = num_gt[b]
        xy0 = np.asarray(jax.random.uniform(ka, (g, 2), jnp.float32, 0.05, 0.5))
        wh = np.asarray(jax.random.uniform(kc, (g, 2), jnp.float32, 0.1, 0.4))
        gt_boxes_list.append(np.concatenate([xy0, xy0 + wh], axis=-1).astype(np.float32))
        gt_labels_list.append(
            np.asarray(jax.random.randint(jax.random.fold_in(k5, b), (g,), 0, C), np.int32))

    matcher = HungarianMatcher(cost_class=1.0, cost_bbox=5.0, cost_giou=2.0)
    assignments, cost = matcher(pred_logits, pred_boxes, gt_labels_list, gt_boxes_list)

    # verify the Pallas-computed cost matrices against a numpy reference
    logits_np = np.asarray(pred_logits)
    boxes_np = np.asarray(pred_boxes)
    for b in range(B):
        ref = reference_cost(logits_np[b], boxes_np[b],
                             gt_labels_list[b], gt_boxes_list[b],
                             1.0, 5.0, 2.0)
        np.testing.assert_allclose(cost[b, :, :num_gt[b]], ref, rtol=1e-4, atol=1e-4)

    for b, (pi, gi) in enumerate(assignments):
        assert len(pi) == len(gi) == min(Q, num_gt[b])

    print("KERNEL_OK")
</pallas_src>

<mosaic_0001>
module attributes {stable_mosaic.version = 11 : i64} {
  func.func @kernel(%arg0: i32, %arg1: memref<2x8x6xf32, #tpu.memory_space<vmem>>, %arg2: memref<2x8x4xf32, #tpu.memory_space<vmem>>, %arg3: memref<2x1x128xi32, #tpu.memory_space<vmem>>, %arg4: memref<2x4x128xf32, #tpu.memory_space<vmem>>, %arg5: memref<2x8x128xf32, #tpu.memory_space<vmem>>) attributes {dimension_semantics = [#tpu.dimension_semantics<parallel>], iteration_bounds = array<i64: 1>, scalar_prefetch = 0 : i64, scratch_operands = 0 : i64, tpu.core_type = #tpu.core_type<tc>, window_params = [{transform_indices = @transform_0, window_bounds = array<i64: 2, 8, 6>}, {transform_indices = @transform_1, window_bounds = array<i64: 2, 8, 4>}, {transform_indices = @transform_2, window_bounds = array<i64: 2, 1, 128>}, {transform_indices = @transform_3, window_bounds = array<i64: 2, 4, 128>}, {transform_indices = @transform_4, window_bounds = array<i64: 2, 8, 128>}]} {
    %c0 = arith.constant 0 : index
    %c0_0 = arith.constant 0 : index
    %c0_1 = arith.constant 0 : index
    %0 = vector.load %arg1[%c0, %c0_0, %c0_1] : memref<2x8x6xf32, #tpu.memory_space<vmem>>, vector<2x8x6xf32>
    %c0_2 = arith.constant 0 : index
    %c0_3 = arith.constant 0 : index
    %c0_4 = arith.constant 0 : index
    %1 = vector.load %arg2[%c0_2, %c0_3, %c0_4] : memref<2x8x4xf32, #tpu.memory_space<vmem>>, vector<2x8x4xf32>
    %c0_5 = arith.constant 0 : index
    %c0_6 = arith.constant 0 : index
    %c0_7 = arith.constant 0 : index
    %2 = vector.load %arg3[%c0_5, %c0_6, %c0_7] : memref<2x1x128xi32, #tpu.memory_space<vmem>>, vector<2x1x128xi32>
    %c0_8 = arith.constant 0 : index
    %c0_9 = arith.constant 0 : index
    %c0_10 = arith.constant 0 : index
    %3 = vector.load %arg4[%c0_8, %c0_9, %c0_10] : memref<2x4x128xf32, #tpu.memory_space<vmem>>, vector<2x4x128xf32>
    %cst = arith.constant dense<0xFF800000> : vector<2x8xf32>
    %4 = vector.multi_reduction <maximumf>, %0, %cst [2] : vector<2x8x6xf32> to vector<2x8xf32>
    %5 = vector.shape_cast %4 : vector<2x8xf32> to vector<2x8x1xf32>
    %6 = vector.broadcast %5 : vector<2x8x1xf32> to vector<2x8x6xf32>
    %7 = arith.subf %0, %6 : vector<2x8x6xf32>
    %8 = math.exp %7 : vector<2x8x6xf32>
    %cst_11 = arith.constant dense<0.000000e+00> : vector<2x8xf32>
    %9 = vector.multi_reduction <add>, %8, %cst_11 [2] : vector<2x8x6xf32> to vector<2x8xf32>
    %10 = vector.shape_cast %9 : vector<2x8xf32> to vector<2x8x1xf32>
    %11 = vector.broadcast %10 : vector<2x8x1xf32> to vector<2x8x6xf32>
    %12 = arith.divf %8, %11 : vector<2x8x6xf32>
    %13 = tpu.iota {dimensions = array<i32: 1>} : vector<2x6x128xi32>
    %14 = vector.broadcast %2 : vector<2x1x128xi32> to vector<2x6x128xi32>
    %15 = arith.cmpi eq, %13, %14 : vector<2x6x128xi32>
    %16 = arith.extui %15 : vector<2x6x128xi1> to vector<2x6x128xi32>
    %17 = arith.sitofp %16 : vector<2x6x128xi32> to vector<2x6x128xf32>
    "tpu.trace_start"() <{level = 10 : i32, message = "bqc,bcg->bqg"}> : () -> ()
    %cst_12 = arith.constant dense<0.000000e+00> : vector<2x8x128xf32>
    %18 = tpu.matmul %12, %17, %cst_12 {dimension_numbers = #tpu.dot_dimension_numbers<[2], [1], [1], [2], [0, 0, 0, 1, 1, 2], [0], [0]>} : vector<2x8x6xf32>, vector<2x6x128xf32>, vector<2x8x128xf32> -> vector<2x8x128xf32>
    "tpu.trace_stop"() : () -> ()
    %cst_13 = arith.constant 0.000000e+00 : f32
    %19 = vector.broadcast %cst_13 : f32 to vector<2x8x128xf32>
    %20 = arith.subf %19, %18 : vector<2x8x128xf32>
    %21 = vector.extract_strided_slice %1 {offsets = [0, 0, 0], sizes = [2, 8, 1], strides = [1, 1, 1]} : vector<2x8x4xf32> to vector<2x8x1xf32>
    %22 = vector.extract_strided_slice %1 {offsets = [0, 0, 1], sizes = [2, 8, 1], strides = [1, 1, 1]} : vector<2x8x4xf32> to vector<2x8x1xf32>
    %23 = vector.extract_strided_slice %1 {offsets = [0, 0, 2], sizes = [2, 8, 1], strides = [1, 1, 1]} : vector<2x8x4xf32> to vector<2x8x1xf32>
    %24 = vector.extract_strided_slice %1 {offsets = [0, 0, 3], sizes = [2, 8, 1], strides = [1, 1, 1]} : vector<2x8x4xf32> to vector<2x8x1xf32>
    %25 = vector.extract_strided_slice %3 {offsets = [0, 0, 0], sizes = [2, 1, 128], strides = [1, 1, 1]} : vector<2x4x128xf32> to vector<2x1x128xf32>
    %26 = vector.extract_strided_slice %3 {offsets = [0, 1, 0], sizes = [2, 1, 128], strides = [1, 1, 1]} : vector<2x4x128xf32> to vector<2x1x128xf32>
    %27 = vector.extract_strided_slice %3 {offsets = [0, 2, 0], sizes = [2, 1, 128], strides = [1, 1, 1]} : vector<2x4x128xf32> to vector<2x1x128xf32>
    %28 = vector.extract_strided_slice %3 {offsets = [0, 3, 0], sizes = [2, 1, 128], strides = [1, 1, 1]} : vector<2x4x128xf32> to vector<2x1x128xf32>
    %29 = arith.addf %25, %27 : vector<2x1x128xf32>
    %cst_14 = arith.constant 5.000000e-01 : f32
    %30 = vector.broadcast %cst_14 : f32 to vector<2x1x128xf32>
    %31 = arith.mulf %29, %30 : vector<2x1x128xf32>
    %32 = arith.addf %26, %28 : vector<2x1x128xf32>
    %cst_15 = arith.constant 5.000000e-01 : f32
    %33 = vector.broadcast %cst_15 : f32 to vector<2x1x128xf32>
    %34 = arith.mulf %32, %33 : vector<2x1x128xf32>
    %35 = arith.subf %27, %25 : vector<2x1x128xf32>
    %36 = arith.subf %28, %26 : vector<2x1x128xf32>
    %37 = vector.broadcast %21 : vector<2x8x1xf32> to vector<2x8x128xf32>
    %38 = vector.broadcast %31 : vector<2x1x128xf32> to vector<2x8x128xf32>
    %39 = arith.subf %37, %38 : vector<2x8x128xf32>
    %40 = math.absf %39 : vector<2x8x128xf32>
    %41 = vector.broadcast %22 : vector<2x8x1xf32> to vector<2x8x128xf32>
    %42 = vector.broadcast %34 : vector<2x1x128xf32> to vector<2x8x128xf32>
    %43 = arith.subf %41, %42 : vector<2x8x128xf32>
    %44 = math.absf %43 : vector<2x8x128xf32>
    %45 = arith.addf %40, %44 : vector<2x8x128xf32>
    %46 = vector.broadcast %23 : vector<2x8x1xf32> to vector<2x8x128xf32>
    %47 = vector.broadcast %35 : vector<2x1x128xf32> to vector<2x8x128xf32>
    %48 = arith.subf %46, %47 : vector<2x8x128xf32>
    %49 = math.absf %48 : vector<2x8x128xf32>
    %50 = arith.addf %45, %49 : vector<2x8x128xf32>
    %51 = vector.broadcast %24 : vector<2x8x1xf32> to vector<2x8x128xf32>
    %52 = vector.broadcast %36 : vector<2x1x128xf32> to vector<2x8x128xf32>
    %53 = arith.subf %51, %52 : vector<2x8x128xf32>
    %54 = math.absf %53 : vector<2x8x128xf32>
    %55 = arith.addf %50, %54 : vector<2x8x128xf32>
    %cst_16 = arith.constant 5.000000e-01 : f32
    %56 = vector.broadcast %cst_16 : f32 to vector<2x8x1xf32>
    %57 = arith.mulf %56, %23 : vector<2x8x1xf32>
    %58 = arith.subf %21, %57 : vector<2x8x1xf32>
    %cst_17 = arith.constant 5.000000e-01 : f32
    %59 = vector.broadcast %cst_17 : f32 to vector<2x8x1xf32>
    %60 = arith.mulf %59, %23 : vector<2x8x1xf32>
    %61 = arith.addf %21, %60 : vector<2x8x1xf32>
    %cst_18 = arith.constant 5.000000e-01 : f32
    %62 = vector.broadcast %cst_18 : f32 to vector<2x8x1xf32>
    %63 = arith.mulf %62, %24 : vector<2x8x1xf32>
    %64 = arith.subf %22, %63 : vector<2x8x1xf32>
    %cst_19 = arith.constant 5.000000e-01 : f32
    %65 = vector.broadcast %cst_19 : f32 to vector<2x8x1xf32>
    %66 = arith.mulf %65, %24 : vector<2x8x1xf32>
    %67 = arith.addf %22, %66 : vector<2x8x1xf32>
    %68 = arith.subf %61, %58 : vector<2x8x1xf32>
    %69 = arith.subf %67, %64 : vector<2x8x1xf32>
    %70 = arith.mulf %68, %69 : vector<2x8x1xf32>
    %71 = arith.subf %27, %25 : vector<2x1x128xf32>
    %72 = arith.subf %28, %26 : vector<2x1x128xf32>
    %73 = arith.mulf %71, %72 : vector<2x1x128xf32>
    %74 = vector.broadcast %58 : vector<2x8x1xf32> to vector<2x8x128xf32>
    %75 = vector.broadcast %25 : vector<2x1x128xf32> to vector<2x8x128xf32>
    %76 = arith.maximumf %74, %75 : vector<2x8x128xf32>
    %77 = vector.broadcast %64 : vector<2x8x1xf32> to vector<2x8x128xf32>
    %78 = vector.broadcast %26 : vector<2x1x128xf32> to vector<2x8x128xf32>
    %79 = arith.maximumf %77, %78 : vector<2x8x128xf32>
    %80 = vector.broadcast %61 : vector<2x8x1xf32> to vector<2x8x128xf32>
    %81 = vector.broadcast %27 : vector<2x1x128xf32> to vector<2x8x128xf32>
    %82 = arith.minimumf %80, %81 : vector<2x8x128xf32>
    %83 = vector.broadcast %67 : vector<2x8x1xf32> to vector<2x8x128xf32>
    %84 = vector.broadcast %28 : vector<2x1x128xf32> to vector<2x8x128xf32>
    %85 = arith.minimumf %83, %84 : vector<2x8x128xf32>
    %86 = arith.subf %82, %76 : vector<2x8x128xf32>
    %cst_20 = arith.constant 0.000000e+00 : f32
    %87 = vector.broadcast %cst_20 : f32 to vector<2x8x128xf32>
    %88 = arith.maximumf %86, %87 : vector<2x8x128xf32>
    %89 = arith.subf %85, %79 : vector<2x8x128xf32>
    %cst_21 = arith.constant 0.000000e+00 : f32
    %90 = vector.broadcast %cst_21 : f32 to vector<2x8x128xf32>
    %91 = arith.maximumf %89, %90 : vector<2x8x128xf32>
    %92 = arith.mulf %88, %91 : vector<2x8x128xf32>
    %93 = vector.broadcast %70 : vector<2x8x1xf32> to vector<2x8x128xf32>
    %94 = vector.broadcast %73 : vector<2x1x128xf32> to vector<2x8x128xf32>
    %95 = arith.addf %93, %94 : vector<2x8x128xf32>
    %96 = arith.subf %95, %92 : vector<2x8x128xf32>
    %97 = arith.divf %92, %96 : vector<2x8x128xf32>
    %98 = vector.broadcast %58 : vector<2x8x1xf32> to vector<2x8x128xf32>
    %99 = vector.broadcast %25 : vector<2x1x128xf32> to vector<2x8x128xf32>
    %100 = arith.minimumf %98, %99 : vector<2x8x128xf32>
    %101 = vector.broadcast %64 : vector<2x8x1xf32> to vector<2x8x128xf32>
    %102 = vector.broadcast %26 : vector<2x1x128xf32> to vector<2x8x128xf32>
    %103 = arith.minimumf %101, %102 : vector<2x8x128xf32>
    %104 = vector.broadcast %61 : vector<2x8x1xf32> to vector<2x8x128xf32>
    %105 = vector.broadcast %27 : vector<2x1x128xf32> to vector<2x8x128xf32>
    %106 = arith.maximumf %104, %105 : vector<2x8x128xf32>
    %107 = vector.broadcast %67 : vector<2x8x1xf32> to vector<2x8x128xf32>
    %108 = vector.broadcast %28 : vector<2x1x128xf32> to vector<2x8x128xf32>
    %109 = arith.maximumf %107, %108 : vector<2x8x128xf32>
    %110 = arith.subf %106, %100 : vector<2x8x128xf32>
    %111 = arith.subf %109, %103 : vector<2x8x128xf32>
    %112 = arith.mulf %110, %111 : vector<2x8x128xf32>
    %113 = arith.subf %112, %96 : vector<2x8x128xf32>
    %114 = arith.divf %113, %112 : vector<2x8x128xf32>
    %115 = arith.subf %97, %114 : vector<2x8x128xf32>
    %cst_22 = arith.constant 0.000000e+00 : f32
    %116 = vector.broadcast %cst_22 : f32 to vector<2x8x128xf32>
    %117 = arith.subf %116, %115 : vector<2x8x128xf32>
    %cst_23 = arith.constant 5.000000e+00 : f32
    %118 = vector.broadcast %cst_23 : f32 to vector<2x8x128xf32>
    %119 = arith.mulf %118, %55 : vector<2x8x128xf32>
    %cst_24 = arith.constant 1.000000e+00 : f32
    %120 = vector.broadcast %cst_24 : f32 to vector<2x8x128xf32>
    %121 = arith.mulf %120, %20 : vector<2x8x128xf32>
    %122 = arith.addf %119, %121 : vector<2x8x128xf32>
    %cst_25 = arith.constant 2.000000e+00 : f32
    %123 = vector.broadcast %cst_25 : f32 to vector<2x8x128xf32>
    %124 = arith.mulf %123, %117 : vector<2x8x128xf32>
    %125 = arith.addf %122, %124 : vector<2x8x128xf32>
    %c0_26 = arith.constant 0 : index
    %c0_27 = arith.constant 0 : index
    %c0_28 = arith.constant 0 : index
    %126 = vector.load %arg5[%c0_26, %c0_27, %c0_28] : memref<2x8x128xf32, #tpu.memory_space<vmem>>, vector<2x8x128xf32>
    tpu.vector_store %arg5[%c0_26, %c0_27, %c0_28], %125 {strides = array<i32>} : memref<2x8x128xf32, #tpu.memory_space<vmem>>, vector<2x8x128xf32>,
    return
  }
  func.func @transform_0(%arg0: i32) -> (i32, i32, i32) {
    %c0_i32 = arith.constant 0 : i32
    %c0_i32_0 = arith.constant 0 : i32
    %c0_i32_1 = arith.constant 0 : i32
    return %arg0, %c0_i32, %c0_i32_0 : i32, i32, i32
  }
  func.func @transform_1(%arg0: i32) -> (i32, i32, i32) {
    %c0_i32 = arith.constant 0 : i32
    %c0_i32_0 = arith.constant 0 : i32
    %c0_i32_1 = arith.constant 0 : i32
    return %arg0, %c0_i32, %c0_i32_0 : i32, i32, i32
  }
  func.func @transform_2(%arg0: i32) -> (i32, i32, i32) {
    %c0_i32 = arith.constant 0 : i32
    %c0_i32_0 = arith.constant 0 : i32
    %c0_i32_1 = arith.constant 0 : i32
    return %arg0, %c0_i32, %c0_i32_0 : i32, i32, i32
  }
  func.func @transform_3(%arg0: i32) -> (i32, i32, i32) {
    %c0_i32 = arith.constant 0 : i32
    %c0_i32_0 = arith.constant 0 : i32
    %c0_i32_1 = arith.constant 0 : i32
    return %arg0, %c0_i32, %c0_i32_0 : i32, i32, i32
  }
  func.func @transform_4(%arg0: i32) -> (i32, i32, i32) {
    %c0_i32 = arith.constant 0 : i32
    %c0_i32_0 = arith.constant 0 : i32
    %c0_i32_1 = arith.constant 0 : i32
    return %arg0, %c0_i32, %c0_i32_0 : i32, i32, i32
  }
}

</mosaic_0001>

<bundles_post_ra>
// kernel: tpu_custom_call.1
= control target key start
LH: loop header
LB: loop body
LE: loop exit
PB: predicated region body
PF: predicated region fallthrough
CT: control target
= control target key end

     0   :  { %vm26_vm0 = vcmask 48128   ;;  %s765_s0 = inlined_call_operand.vmem [shape: f32[2,8,6], index: 0, kind: input, shape index: {}]   ;;  %s766_s1 = inlined_call_operand.vmem [shape: f32[2,8,4], index: 1, kind: input, shape index: {}]   ;;  %s767_s2 = inlined_call_operand.vmem [shape: s32[2,1,128], index: 2, kind: input, shape index: {}]   ;;  %s768_s3 = inlined_call_operand.vmem [shape: f32[2,4,128], index: 3, kind: input, shape index: {}]   ;;  %s769_s4 = inlined_call_operand.hbm [shape: f32[2,8,128], index: 4, kind: output, shape index: {}]  }
   0x1   :  { %v18_v0 = vld [vmem:[%s765_s0] sm:$0xff]  ;;  %v19_v1 = vld [vmem:[%s765_s0 + $0x8] sm:$0xff] }
   0x2   :  { %v27_v2 = vsel %vm26_vm0, %v18_v0, -inf }
   0x3   :  { %9 = vsyncpa [#allocation3], 0  ;;  %28 = vmax.xlane.f32.xlu0 %v27_v2  ;;  %v30_v3 = vsel %vm26_vm0, %v19_v1, -inf  ;;  %v653_v4 = vld [vmem:[%s766_s1] sm:$0xff]  ;;  %s606_s21 = smov 126   ;;  %v661_v17 = vld [vmem:[%s766_s1 + $0x8] sm:$0xff]  ;;  %v49_v21 = vlaneseq }
   0x4   :  { %v324_v5 = vmul.f32 0.5, %v653_v4  ;;  %v325_v20 = vmul.f32 0.5, %v661_v17  ;;  %v607_v24 = vmov 1   ;;  %v520_v25 = vld [vmem:[%s767_s2] ss:$0 sm:$0xff]  ;;  %s608_s1 = smov 127  }
   0x5   :  { %v666_v23 = vshrl.u32 %v49_v21, 7  ;;  %555 = vset.pattern.permute.xlu0 %v607_v24  ;;  %v609_v26 = vmov 0.0   ;;  %vm68_vm2 = vcmask 1045504   ;;  %vm610_vm3 = vmmov 0   ;;  %v521_v28 = vld [vmem:[%s767_s2 + $0x1] ss:$0 sm:$0xff] }
   0x6   :  { %532 = vmatprep.subr.mxu0 %v609_v26  ;;  %534 = vmatprep.mubr.msk.f32.mxu0 %vm610_vm3, %v609_v26  ;;  %v611_v29 = vmov 0   ;;  %v612_v43 = vmov 3   ;;  %v613_v46 = vmov 2   ;;  %v24_v52 = vld [vmem:[%s768_s3] sm:$0xf] }
   0x7   :  { %31 = vmax.xlane.f32.xlu0 %v30_v3  ;;  %vm59_vm1 = vcmp.eq.s32.totalorder %v666_v23, %v520_v25  ;;  %537 = vmatprep.subr.mxu1 %v609_v26  ;;  %vm60_vm4 = vcmp.eq.s32.totalorder %v666_v23, %v521_v28  ;;  %v693_v50 = vsub.s32 2, %v666_v23  ;;  %v230_v55 = vrot.slane %v24_v52, 6 }
   0x8   :  { %v522_v27 = vsel %vm59_vm1, 1.0, %v609_v26  ;;  %539 = vmatprep.mubr.msk.f32.mxu1 %vm610_vm3, %v609_v26  ;;  %553 = vset.pattern.permute.xlu1 %v611_v29  ;;  %v523_v30 = vsel %vm60_vm4, 1.0, %v609_v26  ;;  %v701_v56 = vsub.s32 1, %v666_v23  ;;  %v704_v57 = vsub.s32 3, %v666_v23 }
   0x9   :  { %533 = vmatpush3.msk.msra.mxu0 %vm68_vm2, %v522_v27  ;;  %538 = vmatpush3.msk.msra.mxu1 %vm68_vm2, %v523_v30  ;;  %v707_v58 = vsub.s32 0, %v666_v23  ;;  %v409_v59 = vrot.slane %v24_v52, %v693_v50 }
   0xa   :  { %v427_v3 = vrot.slane %v24_v52, %v704_v57 }
   0xb   :  { %v371_v63 = vrot.slane %v24_v52, %v707_v58 }
  0x1d   :  { %328 = vrot.lane.b32.xlu0 %v324_v5, %s606_s21 }
  0x90   :  { %v29_v6 = vpop.xlane.xlu0 %28 }
  0x91   :  { %v33_v7 = vsub.f32 %v18_v0, %v29_v6  ;;  %v389_v0 = vrot.slane %v24_v52, %v701_v56 }
  0x93   :  { %v35_v8 = vmul.f32 1.442695, %v33_v7 }
  0x94   :  { %v32_v9 = vpop.xlane.xlu0 %31 }
  0x95   :  { %566 = vpow2.f32 %v35_v8  ;;  %v34_v10 = vsub.f32 %v19_v1, %v32_v9  ;;  %v714_v1 = vsub.f32 %v24_v52, %v230_v55  ;;  %v25_v8 = vld [vmem:[%s768_s3 + $0x4] sm:$0xf]  ;;  %s614_s3 = smov [#allocation2]  }
  0x96   :  { %v393_v23 = vrot.slane %v25_v8, %v701_v56  ;;  %v413_v25 = vrot.slane %v25_v8, %v693_v50  ;;  %s509_s30 = sshll.u32 %s614_s3, 4  ;;  %s510_s30 = int_to_ptr.vmem [resolvable:$true] %s509_s30 }
  0x97   :  { %v37_v11 = vmul.f32 1.442695, %v34_v10  ;;  %v352_v7 = vrot.slane %v714_v1, 1  ;;  %s582_s5 = scalar_lea.vmem %s510_s30, 256  ;;  %p587_p1 = scmp.lt.s32.totalorder %s510_s30, %s510_s30 }
  0x98   :  { %v329_v16 = vpop.permute.xlu0 %328  ;;  %p583_p0 = scmp.ne.s32.totalorder %s510_s30, %s582_s5  ;;  %p588_p2 = scmp.lt.s32.totalorder %s582_s5, %s582_s5 }
  0x99   :  { %568 = vpow2.f32 %v37_v11  ;;  %v334_v18 = vsub.f32 %v653_v4, %v329_v16  ;;  %v336_v19 = vadd.f32 %v329_v16, %v653_v4 }
  0x9a   :  { %p589_p3 = por %p588_p2, %p587_p1 }
  0x9b   :  { %v338_v22 = vsub.f32 %v336_v19, %v334_v18 }
  0x9c   :  { %p590_p4 = pnand %p589_p3, %p583_p0 }
  0x9f   :  { %v567_v12 = vpop.eup %566 }
  0xa0   :  { %v39_v13 = vsel %vm26_vm0, %v567_v12, 0.0 }
  0xa1   :  { %40 = vadd.xlane.f32.xlu1 %v39_v13  ;;  %v231_v13 = vrot.slane %v25_v8, 6 }
  0xa3   :  { %v569_v14 = vpop.eup %568 }
  0xa4   :  { %v42_v15 = vsel %vm26_vm0, %v569_v14, 0.0 }
  0xa5   :  { %43 = vadd.xlane.f32.xlu1 %v42_v15  ;;  %v356_v15 = vmul.f32 %v352_v7, %v714_v1 }
  0xa7   :  { %v457_v21 = vrot.slane %v356_v15, %v693_v50 }
  0xb6   :  { %330 = vrot.lane.b32.xlu1 %v325_v20, %s606_s21 }
  0xba   :  { %342 = vrot.lane.b32.xlu1 %v338_v22, %s608_s1 }
 0x12e   :  { %v41_v31 = vpop.xlane.xlu1 %40 }
 0x12f   :  { %570 = vrcp.f32 %v41_v31 }
 0x132   :  { %v44_v32 = vpop.xlane.xlu1 %43 }
 0x133   :  { %572 = vrcp.f32 %v44_v32 }
 0x136   :  { %v331_v33 = vpop.permute.xlu1 %330 }
 0x137   :  { %v335_v34 = vsub.f32 %v661_v17, %v331_v33  ;;  %v337_v35 = vadd.f32 %v331_v33, %v661_v17 }
 0x139   :  { %v571_v36 = vpop.eup %570  ;;  %383 = vperm.xlu0 %555, %v335_v34   ;;  %v339_v37 = vsub.f32 %v337_v35, %v335_v34 }
 0x13a   :  { %v46_v38 = vmul.f32 %v571_v36, %v567_v12  ;;  %v343_v41 = vpop.permute.xlu1 %342 }
 0x13b   :  { %344 = vrot.lane.b32.xlu1 %v339_v37, %s608_s1  ;;  %v348_v42 = vmul.f32 %v343_v41, %v338_v22 }
 0x13c   :  { %535 = vmatmul.mubr.msk.f32.vlgmr.msra.gmra.mrb[0].mxu0 %vm26_vm0, %v46_v38 }
 0x13d   :  { %v573_v39 = vpop.eup %572  ;;  %417 = vperm.xlu0 %555, %v336_v19  }
 0x13e   :  { %v48_v40 = vmul.f32 %v573_v39, %v569_v14 }
 0x13f   :  { %365 = vperm.xlu1 %553, %v335_v34  }
 0x140   :  { %540 = vmatmul.mubr.msk.f32.vlgmr.msra.gmra.mrb[0].mxu1 %vm26_vm0, %v48_v40 }
 0x141   :  { %557 = vset.pattern.permute.xlu0 %v611_v29 }
 0x142   :  { %360 = vperm.xlu0 %557, %v334_v18  }
 0x143   :  { %554 = vset.pattern.permute.xlu1 %v607_v24 }
 0x144   :  { %379 = vperm.xlu1 %554, %v334_v18   ;;  %v725_v18 = vsub.f32 %v25_v8, %v231_v13 }
 0x146   :  { %243 = vperm.xlu0 %557, %v661_v17   ;;  %v353_v31 = vrot.slane %v725_v18, 1 }
 0x148   :  { %556 = vset.pattern.permute.xlu1 %v611_v29 }
 0x149   :  { %398 = vperm.xlu1 %556, %v336_v19  }
 0x14a   :  { %446 = vperm.xlu0 %557, %v348_v42   ;;  %v357_v42 = vmul.f32 %v353_v31, %v725_v18 }
 0x14d   :  { %403 = vperm.xlu1 %556, %v337_v35  }
 0x14e   :  { %561 = vset.pattern.permute.xlu0 %v607_v24 }
 0x14f   :  { %263 = vperm.xlu0 %561, %v661_v17  }
 0x151   :  { %558 = vset.pattern.permute.xlu1 %v607_v24 }
 0x152   :  { %421 = vperm.xlu1 %558, %v337_v35  }
 0x153   :  { %563 = vset.pattern.permute.xlu0 %v612_v43 }
 0x154   :  { %303 = vperm.xlu0 %563, %v653_v4  }
 0x156   :  { %559 = vset.pattern.permute.xlu1 %v611_v29 }
 0x157   :  { %238 = vperm.xlu1 %559, %v653_v4  }
 0x158   :  { %565 = vset.pattern.permute.xlu0 %v611_v29  ;;  %v375_v29 = vrot.slane %v25_v8, %v707_v58 }
 0x1ad   :  { %v345_v44 = vpop.permute.xlu1 %344 }
 0x1ae   :  { %v349_v45 = vmul.f32 %v345_v44, %v339_v37  ;;  %v222_v37 = vrot.slane %v24_v52, 2 }
 0x1b0   :  { %451 = vperm.xlu1 %559, %v349_v45  }
 0x1b4   :  { %560 = vset.pattern.permute.xlu1 %v607_v24 }
 0x1b5   :  { %259 = vperm.xlu1 %560, %v653_v4  }
 0x1b8   :  { %v690_v48 = vpop.permute.xlu0 %383 }
 0x1b9   :  { %562 = vset.pattern.permute.xlu1 %v613_v46  ;;  %v395_v35 = vmax.f32 %v690_v48, %v393_v23 }
 0x1ba   :  { %281 = vperm.xlu1 %562, %v653_v4  }
 0x1bc   :  { %v418_v53 = vpop.permute.xlu0 %417 }
 0x1bd   :  { %v432_v9 = vmin.f32 %v418_v53, %v427_v3  ;;  %v476_v32 = vmax.f32 %v418_v53, %v427_v3  ;;  %v473_v53 = vmin.f32 %v690_v48, %v393_v23 }
 0x1be   :  { %285 = vperm.xlu1 %562, %v661_v17   ;;  %v688_v47 = vpop.permute.xlu1 %365 }
 0x1bf   :  { %v377_v40 = vmax.f32 %v688_v47, %v375_v29 }
 0x1c1   :  { %v361_v2 = vpop.permute.xlu0 %360 }
 0x1c2   :  { %564 = vset.pattern.permute.xlu1 %v612_v43  ;;  %v376_v5 = vmax.f32 %v361_v2, %v371_v63  ;;  %v470_v26 = vmin.f32 %v361_v2, %v371_v63 }
 0x1c3   :  { %307 = vperm.xlu1 %564, %v661_v17   ;;  %v380_v49 = vpop.permute.xlu1 %379  ;;  %v431_v17 = vrot.slane %v25_v8, %v704_v57 }
 0x1c4   :  { %v394_v6 = vmax.f32 %v380_v49, %v389_v0  ;;  %v472_v27 = vmin.f32 %v380_v49, %v389_v0  ;;  %v226_v49 = vadd.f32 %v222_v37, %v24_v52 }
 0x1c5   :  { %v721_v12 = vpop.permute.xlu0 %243 }
 0x1c6   :  { %v438_v14 = vsub.f32 %v432_v9, %v394_v6  ;;  %v480_v38 = vsub.f32 %v476_v32, %v472_v27  ;;  %v228_v2 = vmul.f32 0.5, %v226_v49  ;;  %v295_v32 = vrot.slane %v725_v18, %v693_v50 }
 0x1c8   :  { %v399_v61 = vpop.permute.xlu1 %398  ;;  %v440_v19 = vmax.f32 %v438_v14, 0.0  ;;  %v269_v9 = vrot.slane %v228_v2, %v701_v56  ;;  %v249_v48 = vrot.slane %v228_v2, %v707_v58 }
 0x1c9   :  { %v414_v4 = vmin.f32 %v399_v61, %v409_v59  ;;  %v474_v20 = vmax.f32 %v399_v61, %v409_v59  ;;  %v447_v24 = vpop.permute.xlu0 %446  ;;  %v461_v61 = vrot.slane %v357_v42, %v693_v50 }
 0x1ca   :  { %v462_v34 = vadd.f32 %v457_v21, %v447_v24 }
 0x1cb   :  { %v434_v10 = vsub.f32 %v414_v4, %v376_v5  ;;  %v478_v33 = vsub.f32 %v474_v20, %v470_v26 }
 0x1cc   :  { %v404_v11 = vpop.permute.xlu1 %403 }
 0x1cd   :  { %v436_v16 = vmax.f32 %v434_v10, 0.0  ;;  %v415_v36 = vmin.f32 %v404_v11, %v413_v25  ;;  %v482_v43 = vmul.f32 %v480_v38, %v478_v33  ;;  %v475_v55 = vmax.f32 %v404_v11, %v413_v25 }
 0x1ce   :  { %v264_v52 = vpop.permute.xlu0 %263 }
 0x1cf   :  { %v442_v28 = vmul.f32 %v440_v19, %v436_v16  ;;  %v435_v45 = vsub.f32 %v415_v36, %v377_v40  ;;  %v291_v19 = vrot.slane %v714_v1, %v693_v50 }
 0x1d1   :  { %v422_v22 = vpop.permute.xlu1 %421  ;;  %v464_v39 = vsub.f32 %v462_v34, %v442_v28  ;;  %v437_v63 = vmax.f32 %v435_v45, 0.0 }
 0x1d2   :  { %v433_v30 = vmin.f32 %v422_v22, %v431_v17  ;;  %v477_v46 = vmax.f32 %v422_v22, %v431_v17 }
 0x1d3   :  { %574 = vrcp.f32 %v464_v39  ;;  %v484_v24 = vsub.f32 %v482_v43, %v464_v39 }
 0x1d4   :  { %v439_v41 = vsub.f32 %v433_v30, %v395_v35  ;;  %576 = vrcp.f32 %v482_v43  ;;  %v481_v0 = vsub.f32 %v477_v46, %v473_v53  ;;  %v317_v43 = vrot.slane %v725_v18, %v704_v57 }
 0x1d6   :  { %v239_v44 = vpop.permute.xlu1 %238  ;;  %v441_v59 = vmax.f32 %v439_v41, 0.0 }
 0x1d7   :  { %v254_v17 = vsub.f32 %v239_v44, %v249_v48 }
 0x1d8   :  { %v443_v6 = vmul.f32 %v441_v59, %v437_v63 }
 0x1d9   :  { %v256_v30 = vand.u32 2147483647, %v254_v17 }
 0x1dd   :  { %v575_v15 = vpop.eup %574 }
 0x1de   :  { %v577_v20 = vpop.eup %576  ;;  %v467_v23 = vmul.f32 %v575_v15, %v442_v28 }
 0x20f   :  { %v695_v51 = vpop.f32.mrb[0].mxu0 }
 0x210   :  { %v536_v54 = vpop.f32.mrb[1].mxu0  ;;  %v218_v49 = vsub.f32 0.0, %v695_v51 }
 0x211   :  { %v223_v54 = vrot.slane %v25_v8, 2 }
 0x213   :  { %v710_v60 = vpop.f32.mrb[0].mxu1  ;;  %v227_v3 = vadd.f32 %v223_v54, %v25_v8  ;;  %v304_v8 = vpop.permute.xlu0 %303 }
 0x214   :  { %v541_v62 = vpop.f32.mrb[1].mxu1 }
 0x215   :  { %v471_v62 = vmin.f32 %v688_v47, %v375_v29  ;;  %v229_v13 = vmul.f32 0.5, %v227_v3  ;;  %v313_v47 = vrot.slane %v714_v1, %v704_v57  ;;  %v487_v29 = vmul.f32 %v577_v20, %v484_v24 }
 0x216   :  { %v219_v57 = vsub.f32 0.0, %v710_v60 }
 0x217   :  { %v479_v5 = vsub.f32 %v475_v55, %v471_v62  ;;  %v253_v21 = vrot.slane %v229_v13, %v707_v58  ;;  %v273_v22 = vrot.slane %v229_v13, %v701_v56  ;;  %v318_v26 = vsub.f32 %v304_v8, %v313_v47 }
 0x218   :  { %v490_v1 = vsub.f32 %v467_v23, %v487_v29 }
 0x219   :  { %v483_v10 = vmul.f32 %v481_v0, %v479_v5  ;;  %v255_v33 = vsub.f32 %v721_v12, %v253_v21  ;;  %v275_v34 = vsub.f32 %v264_v52, %v273_v22  ;;  %v320_v58 = vand.u32 2147483647, %v318_v26 }
 0x21a   :  { %v492_v50 = vsub.f32 0.0, %v490_v1 }
 0x21b   :  { %v257_v40 = vand.u32 2147483647, %v255_v33  ;;  %v277_v41 = vand.u32 2147483647, %v275_v34 }
 0x21c   :  { %v498_v62 = vmul.f32 2.0, %v492_v50 }
 0x21d   :  { %v279_v55 = vadd.f32 %v277_v41, %v257_v40 }
 0x22f   :  { %v452_v4 = vpop.permute.xlu1 %451 }
 0x230   :  { %v463_v7 = vadd.f32 %v461_v61, %v452_v4 }
 0x232   :  { %v465_v11 = vsub.f32 %v463_v7, %v443_v6 }
 0x234   :  { %578 = vrcp.f32 %v465_v11  ;;  %v260_v14 = vpop.permute.xlu1 %259  ;;  %v485_v37 = vsub.f32 %v483_v10, %v465_v11 }
 0x235   :  { %v274_v16 = vsub.f32 %v260_v14, %v269_v9  ;;  %580 = vrcp.f32 %v483_v10 }
 0x237   :  { %v276_v25 = vand.u32 2147483647, %v274_v16 }
 0x239   :  { %v282_v27 = vpop.permute.xlu1 %281  ;;  %v278_v35 = vadd.f32 %v276_v25, %v256_v30 }
 0x23a   :  { %v296_v31 = vsub.f32 %v282_v27, %v291_v19 }
 0x23c   :  { %v298_v36 = vand.u32 2147483647, %v296_v31 }
 0x23d   :  { %v286_v56 = vpop.permute.xlu1 %285 }
 0x23e   :  { %v579_v28 = vpop.eup %578  ;;  %v300_v38 = vadd.f32 %v298_v36, %v278_v35  ;;  %v297_v39 = vsub.f32 %v286_v56, %v295_v32 }
 0x23f   :  { %v469_v42 = vmul.f32 %v579_v28, %v443_v6  ;;  %v581_v44 = vpop.eup %580 }
 0x240   :  { %v322_v45 = vadd.f32 %v320_v58, %v300_v38  ;;  %v489_v12 = vmul.f32 %v581_v44, %v485_v37  ;;  %v299_v46 = vand.u32 2147483647, %v297_v39 }
 0x242   :  { %v494_v54 = vmul.f32 5.0, %v322_v45  ;;  %v308_v53 = vpop.permute.xlu1 %307  ;;  %v491_v59 = vsub.f32 %v469_v42, %v489_v12  ;;  %v301_v0 = vadd.f32 %v299_v46, %v279_v55 }
 0x243   :  { %v319_v61 = vsub.f32 %v308_v53, %v317_v43 }
 0x244   :  { %v496_v63 = vadd.f32 %v494_v54, %v218_v49  ;;  %v493_v4 = vsub.f32 0.0, %v491_v59 }
 0x245   :  { %v321_v2 = vand.u32 2147483647, %v319_v61 }
 0x246   :  { %v500_v3 = vadd.f32 %v498_v62, %v496_v63  ;;  %v499_v51 = vmul.f32 2.0, %v493_v4 }
 0x247   :  { %v323_v5 = vadd.f32 %v321_v2, %v301_v0 }
 0x248   :  { %502 = vst [vmem:[#allocation2] sm:$0xff] %v500_v3 }
 0x249   :  { %v495_v18 = vmul.f32 5.0, %v323_v5 }
 0x24b   :  { %v497_v6 = vadd.f32 %v495_v18, %v219_v57 }
 0x24d   :  { %v501_v7 = vadd.f32 %v499_v51, %v497_v6 }
 0x24f   :  { %503 = vst [vmem:[#allocation2 + $0x8] sm:$0xff] %v501_v7 }
 0x250   :  { %593 = shalt.err (!%p590_p4)
}
 0x251   :  { %s594_s8 = scalar_lea.hbm %s769_s4, 256 }
 0x252   :  { %p595_p5 = scmp.ne.s32.totalorder %s769_s4, %s594_s8  ;;  %p598_p6 = scmp.lt.u32.totalorder %s594_s8, %s769_s4 }
 0x254   :  { %p600_p7 = pnand %p598_p6, %p595_p5 }
 0x256   :  { %603 = shalt.err (!%p600_p7)
}
 0x257   :  { %s615_s13 = smov 128   ;;  %s616_s14 = smov 8  }
 0x258   :  { %515 = dma.vmem_to_hbm [thread:$0]  %s510_s30, 256, %s769_s4, [#allocation3], %s615_s13, %s615_s13, %s616_s14  }
 0x259   :  { %604 = dma.done.wait [#allocation3], 256  }
 0x25a   :  { %605 = vsyncadd [#allocation3], 4294967040 }
 0x25b   :  { %519 = vsyncpa [#allocation3], 1 }

</bundles_post_ra>
